<compile_context>
chip_gen: v7x
topology: tpu7x:2x2x1
jax: 0.10.0
libtpu: 0.0.40
codegen_flags: <defaults>
</compile_context>

<pallas_src>
import jax
import jax.numpy as jnp
from jax.experimental import pallas as pl
from jax.experimental.pallas import tpu as pltpu


OUT_PAD = 128  # lane-dense width for the padded fc3 output slab


def _round_up(n, m):
    return ((n + m - 1) // m) * m


def mlp_kernel(x_ref, w1_ref, b1_ref, w2_ref, b2_ref, w3_ref, b3_ref, o_ref):
    # All three layers fused per batch tile. Matmuls accumulate in f32 on the
    # MXU; bias-add + ReLU run in f32 on the VPU.
    x = x_ref[...]
    h1 = jnp.dot(x, w1_ref[...], preferred_element_type=jnp.float32) + b1_ref[...]
    h1 = jnp.maximum(h1, 0.0)

    h2 = jnp.dot(h1.astype(w2_ref.dtype), w2_ref[...],
                 preferred_element_type=jnp.float32) + b2_ref[...]
    h2 = jnp.maximum(h2, 0.0)

    # fc3 with output padded to 128 lanes (columns 1..127 of w3/b3 are zero),
    # so the final store is a full-width, unmasked lane-dense write.
    o = jnp.dot(h2.astype(w3_ref.dtype), w3_ref[...],
                preferred_element_type=jnp.float32) + b3_ref[...]
    o_ref[...] = o.astype(o_ref.dtype)


def net_forward(x, params, *, tb=None, compute_dtype=jnp.float32):
    """Forward pass of Net.

    x: (B, D) float32.  params: dict with w1,b1,w2,b2,w3,b3 (weights as
    (in, out), biases as (1, out)).  Returns (B, 1) float32.

    compute_dtype=jnp.bfloat16 halves MXU/DMA cost of the matmul inputs on
    v6e/v7x at large B (accumulation stays f32).
    """
    B, D = x.shape
    H1 = params["w1"].shape[1]
    H2 = params["w2"].shape[1]
    O = params["w3"].shape[1]

    # ---- tile selection -------------------------------------------------
    # >= 2 grid steps once the batch is big enough to benefit from software
    # pipelining / v7x's 2 TensorCores; otherwise one tile covering the
    # (sublane-aligned) batch.  Per-step VMEM here is tiny (<1 MiB), far under
    # v7x's 64 MiB, so tb=256 is safe on every generation.
    if tb is None:
        tb = 256 if B >= 512 else _round_up(max(B, 8), 8)

    # Pad batch to a multiple of the tile so every step is a full aligned tile.
    Bp = _round_up(B, tb)
    if Bp != B:
        x = jnp.pad(x, ((0, Bp - B), (0, 0)))

    # ---- parameter prep (wrapper-side, plain XLA ops) -------------------
    w1 = params["w1"].astype(compute_dtype)
    w2 = params["w2"].astype(compute_dtype)
    b1 = params["b1"].astype(jnp.float32)
    b2 = params["b2"].astype(jnp.float32)
    # Zero-pad fc3 to a lane-dense 128-wide output slab.
    w3p = jnp.zeros((H2, OUT_PAD), compute_dtype).at[:, :O].set(
        params["w3"].astype(compute_dtype))
    b3p = jnp.zeros((1, OUT_PAD), jnp.float32).at[:, :O].set(
        params["b3"].astype(jnp.float32))

    xc = x.astype(compute_dtype)

    grid = (Bp // tb,)

    out = pl.pallas_call(
        mlp_kernel,
        out_shape=jax.ShapeDtypeStruct((Bp, OUT_PAD), jnp.float32),
        grid_spec=pltpu.PrefetchScalarGridSpec(
            num_scalar_prefetch=0,
            grid=grid,
            in_specs=[
                pl.BlockSpec((tb, D), lambda i: (i, 0)),        # x tile
                # Weights/biases are grid-invariant (constant index_map):
                # Pallas keeps them resident and does not re-DMA per step.
                pl.BlockSpec((D, H1), lambda i: (0, 0)),        # w1
                pl.BlockSpec((1, H1), lambda i: (0, 0)),        # b1
                pl.BlockSpec((H1, H2), lambda i: (0, 0)),       # w2
                pl.BlockSpec((1, H2), lambda i: (0, 0)),        # b2
                pl.BlockSpec((H2, OUT_PAD), lambda i: (0, 0)),  # w3 (padded)
                pl.BlockSpec((1, OUT_PAD), lambda i: (0, 0)),   # b3 (padded)
            ],
            out_specs=pl.BlockSpec((tb, OUT_PAD), lambda i: (i, 0)),
        ),
        compiler_params=pltpu.CompilerParams(
            dimension_semantics=("parallel",)  # batch tiles shard across TCs
        ),
    )(xc, w1, b1, w2, b2, w3p, b3p)

    # Slice back to the real batch and the real (single) output column.
    return out[:B, :O]


def init_params(key, input_dim, dtype=jnp.float32):
    """Deterministic synthetic init matching nn.Linear shapes (transposed)."""
    k1, k2, k3, k4, k5, k6 = jax.random.split(key, 6)

    def lin(kw, kb, fan_in, fan_out):
        bound = 1.0 / jnp.sqrt(fan_in)
        w = jax.random.uniform(kw, (fan_in, fan_out), dtype, -bound, bound)
        b = jax.random.uniform(kb, (1, fan_out), dtype, -bound, bound)
        return w, b

    w1, b1 = lin(k1, k2, input_dim, 128)
    w2, b2 = lin(k3, k4, 128, 64)
    w3, b3 = lin(k5, k6, 64, 1)
    return {"w1": w1, "b1": b1, "w2": w2, "b2": b2, "w3": w3, "b3": b3}


if __name__ == "__main__":
    key = jax.random.PRNGKey(0)
    kx, kp = jax.random.split(key)

    # Batch of tabular feature rows (input_dim = 16). B=512 -> 2 grid steps of
    # 256 rows each, exercising the pipelined / multi-tile path.
    B, D = 512, 16
    x = jax.random.normal(kx, (B, D), dtype=jnp.float32)
    params = init_params(kp, D)

    out = net_forward(x, params)
    out = jax.block_until_ready(out)

    # Pure-JAX reference check of the fused kernel (f32 compute path).
    ref = jnp.maximum(x @ params["w1"] + params["b1"], 0.0)
    ref = jnp.maximum(ref @ params["w2"] + params["b2"], 0.0)
    ref = ref @ params["w3"] + params["b3"]

    assert out.shape == (B, 1), out.shape
    assert jnp.allclose(out, ref, atol=1e-4, rtol=1e-4)

    # Also exercise an odd, non-tile-aligned batch to check padding/slicing.
    xb = jax.random.normal(jax.random.PRNGKey(1), (37, D), dtype=jnp.float32)
    ob = jax.block_until_ready(net_forward(xb, params))
    rb = jnp.maximum(xb @ params["w1"] + params["b1"], 0.0)
    rb = jnp.maximum(rb @ params["w2"] + params["b2"], 0.0)
    rb = rb @ params["w3"] + params["b3"]
    assert ob.shape == (37, 1)
    assert jnp.allclose(ob, rb, atol=1e-4, rtol=1e-4)

    print("KERNEL_OK")
</pallas_src>

<mosaic_0001>
module attributes {stable_mosaic.version = 11 : i64} {
  func.func @mlp_kernel(%arg0: i32, %arg1: memref<256x16xf32, #tpu.memory_space<vmem>>, %arg2: memref<16x128xf32, #tpu.memory_space<vmem>>, %arg3: memref<1x128xf32, #tpu.memory_space<vmem>>, %arg4: memref<128x64xf32, #tpu.memory_space<vmem>>, %arg5: memref<1x64xf32, #tpu.memory_space<vmem>>, %arg6: memref<64x128xf32, #tpu.memory_space<vmem>>, %arg7: memref<1x128xf32, #tpu.memory_space<vmem>>, %arg8: memref<256x128xf32, #tpu.memory_space<vmem>>) attributes {dimension_semantics = [#tpu.dimension_semantics<parallel>], iteration_bounds = array<i64: 2>, scalar_prefetch = 0 : i64, scratch_operands = 0 : i64, tpu.core_type = #tpu.core_type<tc>, window_params = [{transform_indices = @transform_0, window_bounds = array<i64: 256, 16>}, {pipeline_mode = #tpu.pipeline_mode<synchronous>, transform_indices = @transform_1, window_bounds = array<i64: 16, 128>}, {pipeline_mode = #tpu.pipeline_mode<synchronous>, transform_indices = @transform_2, window_bounds = array<i64: 1, 128>}, {pipeline_mode = #tpu.pipeline_mode<synchronous>, transform_indices = @transform_3, window_bounds = array<i64: 128, 64>}, {pipeline_mode = #tpu.pipeline_mode<synchronous>, transform_indices = @transform_4, window_bounds = array<i64: 1, 64>}, {pipeline_mode = #tpu.pipeline_mode<synchronous>, transform_indices = @transform_5, window_bounds = array<i64: 64, 128>}, {pipeline_mode = #tpu.pipeline_mode<synchronous>, transform_indices = @transform_6, window_bounds = array<i64: 1, 128>}, {transform_indices = @transform_7, window_bounds = array<i64: 256, 128>}]} {
    %c0 = arith.constant 0 : index
    %c0_0 = arith.constant 0 : index
    %0 = vector.load %arg1[%c0, %c0_0] : memref<256x16xf32, #tpu.memory_space<vmem>>, vector<256x16xf32>
    %c0_1 = arith.constant 0 : index
    %c0_2 = arith.constant 0 : index
    %1 = vector.load %arg2[%c0_1, %c0_2] : memref<16x128xf32, #tpu.memory_space<vmem>>, vector<16x128xf32>
    %cst = arith.constant dense<0.000000e+00> : vector<256x128xf32>
    %2 = tpu.matmul %0, %1, %cst {dimension_numbers = #tpu.dot_dimension_numbers<[1], [0], [0], [1], [0, 0, 1, 1], [], []>} : vector<256x16xf32>, vector<16x128xf32>, vector<256x128xf32> -> vector<256x128xf32>
    %c0_3 = arith.constant 0 : index
    %c0_4 = arith.constant 0 : index
    %3 = vector.load %arg3[%c0_3, %c0_4] : memref<1x128xf32, #tpu.memory_space<vmem>>, vector<1x128xf32>
    %4 = vector.broadcast %3 : vector<1x128xf32> to vector<256x128xf32>
    %5 = arith.addf %2, %4 : vector<256x128xf32>
    %cst_5 = arith.constant 0.000000e+00 : f32
    %6 = vector.broadcast %cst_5 : f32 to vector<256x128xf32>
    %7 = arith.maximumf %5, %6 : vector<256x128xf32>
    %c0_6 = arith.constant 0 : index
    %c0_7 = arith.constant 0 : index
    %8 = vector.load %arg4[%c0_6, %c0_7] : memref<128x64xf32, #tpu.memory_space<vmem>>, vector<128x64xf32>
    %cst_8 = arith.constant dense<0.000000e+00> : vector<256x64xf32>
    %9 = tpu.matmul %7, %8, %cst_8 {dimension_numbers = #tpu.dot_dimension_numbers<[1], [0], [0], [1], [0, 0, 1, 1], [], []>} : vector<256x128xf32>, vector<128x64xf32>, vector<256x64xf32> -> vector<256x64xf32>
    %c0_9 = arith.constant 0 : index
    %c0_10 = arith.constant 0 : index
    %10 = vector.load %arg5[%c0_9, %c0_10] : memref<1x64xf32, #tpu.memory_space<vmem>>, vector<1x64xf32>
    %11 = vector.broadcast %10 : vector<1x64xf32> to vector<256x64xf32>
    %12 = arith.addf %9, %11 : vector<256x64xf32>
    %cst_11 = arith.constant 0.000000e+00 : f32
    %13 = vector.broadcast %cst_11 : f32 to vector<256x64xf32>
    %14 = arith.maximumf %12, %13 : vector<256x64xf32>
    %c0_12 = arith.constant 0 : index
    %c0_13 = arith.constant 0 : index
    %15 = vector.load %arg6[%c0_12, %c0_13] : memref<64x128xf32, #tpu.memory_space<vmem>>, vector<64x128xf32>
    %cst_14 = arith.constant dense<0.000000e+00> : vector<256x128xf32>
    %16 = tpu.matmul %14, %15, %cst_14 {dimension_numbers = #tpu.dot_dimension_numbers<[1], [0], [0], [1], [0, 0, 1, 1], [], []>} : vector<256x64xf32>, vector<64x128xf32>, vector<256x128xf32> -> vector<256x128xf32>
    %c0_15 = arith.constant 0 : index
    %c0_16 = arith.constant 0 : index
    %17 = vector.load %arg7[%c0_15, %c0_16] : memref<1x128xf32, #tpu.memory_space<vmem>>, vector<1x128xf32>
    %18 = vector.broadcast %17 : vector<1x128xf32> to vector<256x128xf32>
    %19 = arith.addf %16, %18 : vector<256x128xf32>
    %c0_17 = arith.constant 0 : index
    %c0_18 = arith.constant 0 : index
    %20 = vector.load %arg8[%c0_17, %c0_18] : memref<256x128xf32, #tpu.memory_space<vmem>>, vector<256x128xf32>
    tpu.vector_store %arg8[%c0_17, %c0_18], %19 {strides = array<i32>} : memref<256x128xf32, #tpu.memory_space<vmem>>, vector<256x128xf32>,
    return
  }
  func.func @transform_0(%arg0: i32) -> (i32, i32) {
    %c0_i32 = arith.constant 0 : i32
    %c0_i32_0 = arith.constant 0 : i32
    return %arg0, %c0_i32 : i32, i32
  }
  func.func @transform_1(%arg0: i32) -> (i32, i32) {
    %c0_i32 = arith.constant 0 : i32
    %c0_i32_0 = arith.constant 0 : i32
    %c0_i32_1 = arith.constant 0 : i32
    return %c0_i32, %c0_i32_0 : i32, i32
  }
  func.func @transform_2(%arg0: i32) -> (i32, i32) {
    %c0_i32 = arith.constant 0 : i32
    %c0_i32_0 = arith.constant 0 : i32
    %c0_i32_1 = arith.constant 0 : i32
    return %c0_i32, %c0_i32_0 : i32, i32
  }
  func.func @transform_3(%arg0: i32) -> (i32, i32) {
    %c0_i32 = arith.constant 0 : i32
    %c0_i32_0 = arith.constant 0 : i32
    %c0_i32_1 = arith.constant 0 : i32
    return %c0_i32, %c0_i32_0 : i32, i32
  }
  func.func @transform_4(%arg0: i32) -> (i32, i32) {
    %c0_i32 = arith.constant 0 : i32
    %c0_i32_0 = arith.constant 0 : i32
    %c0_i32_1 = arith.constant 0 : i32
    return %c0_i32, %c0_i32_0 : i32, i32
  }
  func.func @transform_5(%arg0: i32) -> (i32, i32) {
    %c0_i32 = arith.constant 0 : i32
    %c0_i32_0 = arith.constant 0 : i32
    %c0_i32_1 = arith.constant 0 : i32
    return %c0_i32, %c0_i32_0 : i32, i32
  }
  func.func @transform_6(%arg0: i32) -> (i32, i32) {
    %c0_i32 = arith.constant 0 : i32
    %c0_i32_0 = arith.constant 0 : i32
    %c0_i32_1 = arith.constant 0 : i32
    return %c0_i32, %c0_i32_0 : i32, i32
  }
  func.func @transform_7(%arg0: i32) -> (i32, i32) {
    %c0_i32 = arith.constant 0 : i32
    %c0_i32_0 = arith.constant 0 : i32
    return %arg0, %c0_i32 : i32, i32
  }
}

</mosaic_0001>

<bundles_post_ra>
// kernel: tpu_custom_call.1
= control target key start
LH: loop header
LB: loop body
LE: loop exit
PB: predicated region body
PF: predicated region fallthrough
CT: control target
= control target key end

     0   :  { %12 = vsyncpa [#allocation3], 0  ;;  %s2437_s0 = inlined_call_operand.vmem [shape: f32[512,16], index: 0, kind: input, shape index: {}]   ;;  %s2438_s1 = inlined_call_operand.vmem [shape: f32[16,128], index: 1, kind: input, shape index: {}]   ;;  %s2439_s2 = inlined_call_operand.vmem [shape: f32[1,128], index: 2, kind: input, shape index: {}]   ;;  %s2440_s3 = inlined_call_operand.vmem [shape: f32[128,64], index: 3, kind: input, shape index: {}]   ;;  %s2441_s4 = inlined_call_operand.vmem [shape: f32[1,64], index: 4, kind: input, shape index: {}]   ;;  %s2442_s5 = inlined_call_operand.vmem [shape: f32[64,128], index: 5, kind: input, shape index: {}]   ;;  %s2443_s6 = inlined_call_operand.vmem [shape: f32[1,128], index: 6, kind: input, shape index: {}]   ;;  %s2444_s7 = inlined_call_operand.hbm [shape: f32[512,128], index: 7, kind: output, shape index: {}]  }
   0x1   :  { %14 = vsyncpa [#allocation3 + $0x1], 0  ;;  %s2000_s24 = smov 0   ;;  %s2002_s25 = smov 0  }
   0x2   :  { %s2004_s26 = smov 0   ;;  %s2006_s27 = smov 0  }
   0x3 LB: > { %s2021_s28 = sadd.s32 4294967295, %s1955_s27   ;;  %s1400_s29 = sadd.s32 4294967294, %s1955_s27   ;;  %s1955_s27 = sphi %s2006_s27, %s2450_s27   ;;  %s1951_s26 = sphi %s2004_s26, %s2449_s26   ;;  %s1947_s25 = sphi %s2002_s25, %s2448_s25   ;;  %s1943_s24 = sphi %s2000_s24, %s2447_s24  }
   0x4   : > { %s2025_s30 = sadd.s32 1, %s1955_s27   ;;  %s179_s8 = sadd.s32 1, %s1951_s26 }
   0x5   : > { %s176_s9 = ssub.s32 %s1955_s27, %s2025_s30  ;;  %p189_p0 = scmp.ne.s32.totalorder %s1951_s26, %s1947_s25 }
   0x6   : > { %p177_p1 = scmp.eq.s32.totalorder %s176_s9, 0  ;;  %p190_p2 = scmp.eq.s32.totalorder %s2021_s28, 1 }
   0x7   : > { %p195_p3 = scmp.ne.s32.totalorder %s1947_s25, %s1943_s24  ;;  %p196_p4 = scmp.eq.s32.totalorder %s1400_s29, 1 }
   0x8   : > { %s2036_s10 = scalar_select %p177_p1, %s1951_s26, %s179_s8  }
   0x9   : > { %p2038_p5 = por %p190_p2, %p189_p0  ;;  %p2042_p6 = por %p196_p4, %p195_p3 }
   0xa   : > { %p1403_p7 = scmp.ge.s32.totalorder %s1955_s27, 1  ;;  %p241_p8 = scmp.lt.s32.totalorder %s1955_s27, 3 }
   0xc   : > { %p242_p9 = pnand %p1403_p7, %p241_p8 }
   0xd   : > { %v312_v0 = vld [vmem:[%s2438_s1] sm:$0xff] (!%p242_p9)  ;;  %v313_v1 = vld [vmem:[%s2438_s1 + $0x8] sm:$0xff] (!%p242_p9)  ;;  %s1405_s17 = sshll.u32 (!%p242_p9), %s2021_s28, 5  ;;  %vm321_vm0 = vcmask (!%p242_p9), 130048   ;;  %v677_v9 = vld [vmem:[%s2440_s3 + $0x10] sm:$0xff] (!%p242_p9)  ;;  %vm970_vm1 = vcmask (!%p242_p9), 523264  }
   0xe   : > { %245 = sbr.rel (%p242_p9) target bundleno = 752 (0x2f0), region = 48  ;;  %v675_v2 = vld [vmem:[%s2440_s3] sm:$0xff] (!%p242_p9)  ;;  %v1798_v3 = vpack.c.bf16 (!%p242_p9), %v313_v1, %v312_v0  ;;  %p274_p10 = scmp.lt.s32.totalorder (!%p242_p9), %s1405_s17, 63  ;;  %v676_v4 = vld [vmem:[%s2440_s3 + $0x8] sm:$0xff] (!%p242_p9)  ;;  %v678_v10 = vld [vmem:[%s2440_s3 + $0x18] sm:$0xff] (!%p242_p9) }
   0xf   : > { %v1802_v5 = vpack.c.bf16 (!%p242_p9), %v676_v4, %v675_v2  ;;  %v1806_v15 = vpack.c.bf16 (!%p242_p9), %v678_v10, %v677_v9  ;;  %v679_v17 = vld [vmem:[%s2440_s3 + $0x20] sm:$0xff] (!%p242_p9)  ;;  %v680_v18 = vld [vmem:[%s2440_s3 + $0x28] sm:$0xff] (!%p242_p9)  ;;  %v681_v24 = vld [vmem:[%s2440_s3 + $0x30] sm:$0xff] (!%p242_p9)  ;;  %s270_s19 = sand.u32 (!%p242_p9), 1, %s1947_s25   ;;  %s1479_s29 = sshll.u32 (!%p242_p9), %s2021_s28, 12 }
  0x10   : > { %1799 = vmatprep.subr.bf16.mxu0 (!%p242_p9), %v1798_v3  ;;  %1850 = vmatprep.subr.bf16.mxu1 (!%p242_p9), %v1798_v3  ;;  %v1810_v23 = vpack.c.bf16 (!%p242_p9), %v680_v18, %v679_v17  ;;  %v682_v25 = vld [vmem:[%s2440_s3 + $0x38] sm:$0xff] (!%p242_p9)  ;;  %v683_v31 = vld [vmem:[%s2440_s3 + $0x40] sm:$0xff] (!%p242_p9)  ;;  %v684_v32 = vld [vmem:[%s2440_s3 + $0x48] sm:$0xff] (!%p242_p9)  ;;  %s1404_s20 = sshll.u32 (!%p242_p9), %s270_s19, 8  ;;  %s2387_s15 = scalar_lea.hbm (!%p242_p9), %s2444_s7, %s1479_s29 }
  0x11   : > { %1801 = vmatpush3.bf16.msra.mxu0 (!%p242_p9), %v1798_v3  ;;  %1851 = vmatpush3.bf16.msra.mxu1 (!%p242_p9), %v1798_v3  ;;  %v1814_v30 = vpack.c.bf16 (!%p242_p9), %v682_v25, %v681_v24  ;;  %v1818_v37 = vpack.c.bf16 (!%p242_p9), %v684_v32, %v683_v31  ;;  %v685_v38 = vld [vmem:[%s2440_s3 + $0x50] sm:$0xff] (!%p242_p9)  ;;  %v686_v39 = vld [vmem:[%s2440_s3 + $0x58] sm:$0xff] (!%p242_p9)  ;;  %v687_v45 = vld [vmem:[%s2440_s3 + $0x60] sm:$0xff] (!%p242_p9)  ;;  %s2321_s23 = scalar_lea.vmem (!%p242_p9), [#allocation2], %s1404_s20  ;;  %s2396_s28 = scalar_lea.sflag (!%p242_p9), [#allocation3], %s270_s19 }
  0x12   : > { %1803 = vmatprep.subr.bf16.mxu1 (!%p242_p9), %v1802_v5  ;;  %v1822_v44 = vpack.c.bf16 (!%p242_p9), %v686_v39, %v685_v38  ;;  %v688_v46 = vld [vmem:[%s2440_s3 + $0x68] sm:$0xff] (!%p242_p9)  ;;  %v689_v56 = vld [vmem:[%s2440_s3 + $0x70] sm:$0xff] (!%p242_p9)  ;;  %v690_v57 = vld [vmem:[%s2440_s3 + $0x78] sm:$0xff] (!%p242_p9)  ;;  %s1338_s9 = sshll.u32 (!%p242_p9), %s2321_s23, 4  ;;  %s2389_s9 = int_to_ptr.vmem [resolvable:$true] %s1338_s9 }
  0x13   : > { %v1826_v51 = vpack.c.bf16 (!%p242_p9), %v688_v46, %v687_v45  ;;  %v1830_v58 = vpack.c.bf16 (!%p242_p9), %v690_v57, %v689_v56  ;;  %v955_v59 = vld [vmem:[%s2442_s5] sm:$0xff] (!%p242_p9)  ;;  %v956_v60 = vld [vmem:[%s2442_s5 + $0x8] sm:$0xff] (!%p242_p9)  ;;  %v957_v61 = vld [vmem:[%s2442_s5 + $0x10] sm:$0xff] (!%p242_p9)  ;;  %s1893_s16 = scalar_lea.vmem (!%p242_p9), %s2389_s9, 4096 }
  0x14   : > { %v1834_v62 = vpack.c.bf16 (!%p242_p9), %v956_v60, %v955_v59  ;;  %v958_v63 = vld [vmem:[%s2442_s5 + $0x18] sm:$0xff] (!%p242_p9)  ;;  %v959_v1 = vld [vmem:[%s2442_s5 + $0x20] sm:$0xff] (!%p242_p9)  ;;  %v960_v2 = vld [vmem:[%s2442_s5 + $0x28] sm:$0xff] (!%p242_p9)  ;;  %p1894_p11 = scmp.ne.s32.totalorder (!%p242_p9), %s2389_s9, %s1893_s16 }
  0x15   : > { %s2452_s17 = smov (!%p274_p10, %s1405_s17), 63  ;;  %v1838_v0 = vpack.c.bf16 %v958_v63, %v957_v61  ;;  %v1842_v3 = vpack.c.bf16 %v960_v2, %v959_v1  ;;  %v961_v4 = vld [vmem:[%s2442_s5 + $0x30] sm:$0xff] }
  0x16   : > { %s1406_s22 = sshll.u32 %s2452_s17, 3  ;;  %1835 = vmatprep.subr.bf16.mxu0 %v1834_v62  ;;  %p1895_p12 = pnand %p1894_p11, %p2038_p5 }
  0x17   : > { %s2064_s8 = scalar_lea.vmem %s2437_s0, %s1406_s22 }
  0x18   : > { %v280_v6 = vld [vmem:[%s2064_s8] sm:$0xff]  ;;  %v281_v7 = vld [vmem:[%s2064_s8 + $0x8] sm:$0xff]  ;;  %v282_v8 = vld [vmem:[%s2064_s8 + $0x10] sm:$0xff]  ;;  %p1896_p13 = pneg %p1895_p12 }
  0x19   : > { %1606 = vmatprep.mubr.msk.f32.mxu0 %vm321_vm0, %v280_v6  ;;  %v283_v11 = vld [vmem:[%s2064_s8 + $0x18] sm:$0xff]  ;;  %v284_v12 = vld [vmem:[%s2064_s8 + $0x20] sm:$0xff]  ;;  %v297_v14 = vld [vmem:[%s2064_s8 + $0x88] sm:$0xff] }
  0x1a   : > { %1607 = vmatmul.mubr.msk.f32.vlgmr.msra.gmra.mrb[0].mxu0 %vm321_vm0, %v281_v7  ;;  %v296_v13 = vld [vmem:[%s2064_s8 + $0x80] sm:$0xff]  ;;  %v298_v16 = vld [vmem:[%s2064_s8 + $0x90] sm:$0xff]  ;;  %v285_v19 = vld [vmem:[%s2064_s8 + $0x28] sm:$0xff] }
  0x1b   : > { %1609 = vmatprep.mubr.msk.f32.mxu0 %vm321_vm0, %v282_v8  ;;  %1630 = vmatprep.mubr.msk.f32.mxu1 %vm321_vm0, %v296_v13  ;;  %v286_v20 = vld [vmem:[%s2064_s8 + $0x30] sm:$0xff]  ;;  %v299_v21 = vld [vmem:[%s2064_s8 + $0x98] sm:$0xff]  ;;  %v300_v22 = vld [vmem:[%s2064_s8 + $0xa0] sm:$0xff] }
  0x1c   : > { %1631 = vmatmul.mubr.msk.f32.vlgmr.msra.gmra.mrb[0].mxu1 %vm321_vm0, %v297_v14  ;;  %v287_v26 = vld [vmem:[%s2064_s8 + $0x38] sm:$0xff]  ;;  %v288_v27 = vld [vmem:[%s2064_s8 + $0x40] sm:$0xff]  ;;  %v301_v28 = vld [vmem:[%s2064_s8 + $0xa8] sm:$0xff]  ;;  %1837 = vmatpush3.bf16.msra.mxu0 %v1834_v62 }
  0x1d   : > { %1633 = vmatprep.mubr.msk.f32.mxu1 %vm321_vm0, %v298_v16  ;;  %1805 = vmatpush3.bf16.msra.mxu1 %v1802_v5  ;;  %v302_v29 = vld [vmem:[%s2064_s8 + $0xb0] sm:$0xff]  ;;  %v289_v33 = vld [vmem:[%s2064_s8 + $0x48] sm:$0xff]  ;;  %v303_v35 = vld [vmem:[%s2064_s8 + $0xb8] sm:$0xff] }
  0x1e   : > { %1610 = vmatmul.mubr.msk.f32.gmra.mrb[2].mxu0 %vm321_vm0, %v283_v11  ;;  %1807 = vmatprep.subr.bf16.mxu1 %v1806_v15  ;;  %v290_v34 = vld [vmem:[%s2064_s8 + $0x50] sm:$0xff]  ;;  %v304_v36 = vld [vmem:[%s2064_s8 + $0xc0] sm:$0xff]  ;;  %v291_v40 = vld [vmem:[%s2064_s8 + $0x58] sm:$0xff] }
  0x1f   : > { %1612 = vmatprep.mubr.msk.f32.mxu0 %vm321_vm0, %v284_v12  ;;  %v292_v41 = vld [vmem:[%s2064_s8 + $0x60] sm:$0xff]  ;;  %v305_v42 = vld [vmem:[%s2064_s8 + $0xc8] sm:$0xff]  ;;  %v306_v43 = vld [vmem:[%s2064_s8 + $0xd0] sm:$0xff]  ;;  %1839 = vmatprep.subr.bf16.mxu0 %v1838_v0 }
  0x20   : > { %1634 = vmatmul.mubr.msk.f32.gmra.mrb[2].mxu1 %vm321_vm0, %v299_v21  ;;  %v293_v47 = vld [vmem:[%s2064_s8 + $0x68] sm:$0xff]  ;;  %v294_v48 = vld [vmem:[%s2064_s8 + $0x70] sm:$0xff]  ;;  %v307_v49 = vld [vmem:[%s2064_s8 + $0xd8] sm:$0xff]  ;;  %1841 = vmatpush3.bf16.msra.mxu0 %v1838_v0 }
  0x21   : > { %1636 = vmatprep.mubr.msk.f32.mxu1 %vm321_vm0, %v300_v22  ;;  %1809 = vmatpush3.bf16.msra.mxu1 %v1806_v15  ;;  %v308_v50 = vld [vmem:[%s2064_s8 + $0xe0] sm:$0xff]  ;;  %v295_v52 = vld [vmem:[%s2064_s8 + $0x78] sm:$0xff]  ;;  %v309_v53 = vld [vmem:[%s2064_s8 + $0xe8] sm:$0xff] }
  0x22   : > { %1613 = vmatmul.mubr.msk.f32.gmra.mrb[4].mxu0 %vm321_vm0, %v285_v19  ;;  %1811 = vmatprep.subr.bf16.mxu1 %v1810_v23  ;;  %v310_v54 = vld [vmem:[%s2064_s8 + $0xf0] sm:$0xff]  ;;  %v311_v55 = vld [vmem:[%s2064_s8 + $0xf8] sm:$0xff]  ;;  %v2199_v7 = vld [vmem:[%s2439_s2] ss:$0 sm:$0xff]  ;;  %s1957_s8 = smov [#allocation2]  }
  0x23   : > { %1615 = vmatprep.mubr.msk.f32.mxu0 %vm321_vm0, %v286_v20  ;;  %v962_v5 = vld [vmem:[%s2442_s5 + $0x38] sm:$0xff]  ;;  %1843 = vmatprep.subr.bf16.mxu0 %v1842_v3  ;;  %s1897_s17 = sshll.u32 %s1957_s8, 4  ;;  %s1898_s17 = int_to_ptr.vmem [resolvable:$false] %s1897_s17 }
  0x24   : > { %1637 = vmatmul.mubr.msk.f32.gmra.mrb[4].mxu1 %vm321_vm0, %v301_v28  ;;  %v1846_v6 = vpack.c.bf16 %v962_v5, %v961_v4  ;;  %1845 = vmatpush3.bf16.msra.mxu0 %v1842_v3  ;;  %s1899_s18 = scalar_lea.vmem %s1898_s17, 8192  ;;  %p1900_p0 = scmp.lt.s32.totalorder %s2389_s9, %s1898_s17 }
  0x25   : > { %1639 = vmatprep.mubr.msk.f32.mxu1 %vm321_vm0, %v302_v29  ;;  %1813 = vmatpush3.bf16.msra.mxu1 %v1810_v23  ;;  %p1901_p1 = scmp.lt.s32.totalorder %s1899_s18, %s1893_s16 }
  0x26   : > { %1616 = vmatmul.mubr.msk.f32.gmra.mrb[6].mxu0 %vm321_vm0, %v287_v26  ;;  %1815 = vmatprep.subr.bf16.mxu1 %v1814_v30 }
  0x27   : > { %1618 = vmatprep.mubr.msk.f32.mxu0 %vm321_vm0, %v288_v27  ;;  %1847 = vmatprep.subr.bf16.mxu0 %v1846_v6  ;;  %p1902_p2 = por %p1901_p1, %p1900_p0 }
  0x28   : > { %1640 = vmatmul.mubr.msk.f32.gmra.mrb[6].mxu1 %vm321_vm0, %v303_v35  ;;  %1849 = vmatpush3.bf16.msra.mxu0 %v1846_v6 }
  0x29   : > { %1642 = vmatprep.mubr.msk.f32.mxu1 %vm321_vm0, %v304_v36  ;;  %1817 = vmatpush3.bf16.msra.mxu1 %v1814_v30  ;;  %p1903_p3 = pnand %p1902_p2, %p1896_p13 }
  0x2a   : > { %1619 = vmatmul.mubr.msk.f32.gmra.mrb[8].mxu0 %vm321_vm0, %v289_v33  ;;  %1819 = vmatprep.subr.bf16.mxu1 %v1818_v37 }
  0x2b   : > { %1621 = vmatprep.mubr.msk.f32.mxu0 %vm321_vm0, %v290_v34 }
  0x2c   : > { %1643 = vmatmul.mubr.msk.f32.gmra.mrb[8].mxu1 %vm321_vm0, %v305_v42 }
  0x2d   : > { %1645 = vmatprep.mubr.msk.f32.mxu1 %vm321_vm0, %v306_v43  ;;  %1821 = vmatpush3.bf16.msra.mxu1 %v1818_v37 }
  0x2e   : > { %1622 = vmatmul.mubr.msk.f32.gmra.mrb[10].mxu0 %vm321_vm0, %v291_v40  ;;  %1823 = vmatprep.subr.bf16.mxu1 %v1822_v44 }
  0x2f   : > { %1624 = vmatprep.mubr.msk.f32.mxu0 %vm321_vm0, %v292_v41 }
  0x30   : > { %1646 = vmatmul.mubr.msk.f32.gmra.mrb[10].mxu1 %vm321_vm0, %v307_v49 }
  0x31   : > { %1648 = vmatprep.mubr.msk.f32.mxu1 %vm321_vm0, %v308_v50  ;;  %1825 = vmatpush3.bf16.msra.mxu1 %v1822_v44 }
  0x32   : > { %1625 = vmatmul.mubr.msk.f32.gmra.mrb[12].mxu0 %vm321_vm0, %v293_v47  ;;  %1827 = vmatprep.subr.bf16.mxu1 %v1826_v51 }
  0x33   : > { %1627 = vmatprep.mubr.msk.f32.mxu0 %vm321_vm0, %v294_v48 }
  0x34   : > { %1649 = vmatmul.mubr.msk.f32.gmra.mrb[12].mxu1 %vm321_vm0, %v309_v53 }
  0x35   : > { %1651 = vmatprep.mubr.msk.f32.mxu1 %vm321_vm0, %v310_v54  ;;  %1829 = vmatpush3.bf16.msra.mxu1 %v1826_v51 }
  0x36   : > { %1628 = vmatmul.mubr.msk.f32.gmra.mrb[14].mxu0 %vm321_vm0, %v295_v52  ;;  %1831 = vmatprep.subr.bf16.mxu1 %v1830_v58 }
  0x38   : > { %1652 = vmatmul.mubr.msk.f32.gmra.mrb[14].mxu1 %vm321_vm0, %v311_v55 }
  0x39   : > { %1833 = vmatpush3.bf16.msra.mxu1 %v1830_v58 }
  0xed   : > { %v1608_v8 = vpop.f32.mrb[0].mxu0 }
  0xee   : > { %v490_v9 = vadd.f32 %v1608_v8, %v2199_v7  ;;  %v484_v10 = vpop.f32.mrb[1].mxu0 }
  0xef   : > { %v485_v11 = vadd.f32 %v2199_v7, %v484_v10  ;;  %v2204_v17 = vpop.f32.mrb[0].mxu1 }
  0xf0   : > { %v644_v14 = vmax.f32 %v490_v9, 0.0  ;;  %v564_v19 = vpop.f32.mrb[1].mxu1  ;;  %v570_v10 = vadd.f32 %v2204_v17, %v2199_v7 }
  0xf1   : > { %v643_v12 = vmax.f32 %v485_v11, 0.0  ;;  %v1611_v13 = vpop.f32.mrb[2].mxu0  ;;  %v565_v62 = vadd.f32 %v2199_v7, %v564_v19 }
  0xf2   : > { %v500_v15 = vadd.f32 %v1611_v13, %v2199_v7  ;;  %v494_v16 = vpop.f32.mrb[3].mxu0 }
  0xf3   : > { %v495_v18 = vadd.f32 %v2199_v7, %v494_v16  ;;  %1686 = vmatprep.mubr.f32.mxu1 %v643_v12  ;;  %v2208_v25 = vpop.f32.mrb[2].mxu1  ;;  %v659_v6 = vmax.f32 %v565_v62, 0.0 }
  0xf4   : > { %1687 = vmatmul.mubr.f32.vlgmr.msra.gmra.mrb[16].mxu1 %v644_v14  ;;  %v646_v22 = vmax.f32 %v500_v15, 0.0  ;;  %v574_v27 = vpop.f32.mrb[3].mxu1  ;;  %v660_v15 = vmax.f32 %v570_v10, 0.0  ;;  %v580_v16 = vadd.f32 %v2208_v25, %v2199_v7 }
  0xf5   : > { %v645_v20 = vmax.f32 %v495_v18, 0.0  ;;  %v1614_v21 = vpop.f32.mrb[4].mxu0  ;;  %v575_v8 = vadd.f32 %v2199_v7, %v574_v27 }
  0xf6   : > { %v510_v23 = vadd.f32 %v1614_v21, %v2199_v7  ;;  %v504_v24 = vpop.f32.mrb[5].mxu0 }
  0xf7   : > { %v505_v26 = vadd.f32 %v2199_v7, %v504_v24  ;;  %1689 = vmatprep.mubr.f32.mxu1 %v645_v20  ;;  %v2212_v33 = vpop.f32.mrb[4].mxu1  ;;  %v661_v13 = vmax.f32 %v575_v8, 0.0  ;;  %v662_v20 = vmax.f32 %v580_v16, 0.0 }
  0xf8   : > { %1690 = vmatmul.mubr.f32.gmra.mrb[18].mxu1 %v646_v22  ;;  %v648_v30 = vmax.f32 %v510_v23, 0.0  ;;  %v584_v35 = vpop.f32.mrb[5].mxu1  ;;  %v590_v17 = vadd.f32 %v2212_v33, %v2199_v7 }
  0xf9   : > { %v647_v28 = vmax.f32 %v505_v26, 0.0  ;;  %v1617_v29 = vpop.f32.mrb[6].mxu0  ;;  %v585_v14 = vadd.f32 %v2199_v7, %v584_v35 }
  0xfa   : > { %v520_v31 = vadd.f32 %v1617_v29, %v2199_v7  ;;  %v514_v32 = vpop.f32.mrb[7].mxu0  ;;  %v664_v23 = vmax.f32 %v590_v17, 0.0 }
  0xfb   : > { %v515_v34 = vadd.f32 %v2199_v7, %v514_v32  ;;  %1692 = vmatprep.mubr.f32.mxu1 %v647_v28  ;;  %v1641_v41 = vpop.f32.mrb[6].mxu1  ;;  %v663_v18 = vmax.f32 %v585_v14, 0.0 }
  0xfc   : > { %1693 = vmatmul.mubr.f32.gmra.mrb[20].mxu1 %v648_v30  ;;  %v650_v38 = vmax.f32 %v520_v31, 0.0  ;;  %v594_v43 = vpop.f32.mrb[7].mxu1  ;;  %v600_v24 = vadd.f32 %v1641_v41, %v2199_v7  ;;  %v2245_v41 = vld [vmem:[%s2441_s4] ss:$0 sm:$0xff] }
  0xfd   : > { %v649_v36 = vmax.f32 %v515_v34, 0.0  ;;  %v1620_v37 = vpop.f32.mrb[8].mxu0  ;;  %v595_v19 = vadd.f32 %v2199_v7, %v594_v43 }
  0xfe   : > { %v530_v39 = vadd.f32 %v1620_v37, %v2199_v7  ;;  %v524_v40 = vpop.f32.mrb[9].mxu0  ;;  %v666_v27 = vmax.f32 %v600_v24, 0.0 }
  0xff   : > { %v525_v42 = vadd.f32 %v2199_v7, %v524_v40  ;;  %1695 = vmatprep.mubr.f32.mxu1 %v649_v36  ;;  %v1644_v49 = vpop.f32.mrb[8].mxu1  ;;  %v665_v21 = vmax.f32 %v595_v19, 0.0 }
 0x100   : > { %1696 = vmatmul.mubr.f32.gmra.mrb[22].mxu1 %v650_v38  ;;  %v652_v46 = vmax.f32 %v530_v39, 0.0  ;;  %v604_v51 = vpop.f32.mrb[9].mxu1  ;;  %v610_v28 = vadd.f32 %v1644_v49, %v2199_v7 }
 0x101   : > { %v651_v44 = vmax.f32 %v525_v42, 0.0  ;;  %v1623_v45 = vpop.f32.mrb[10].mxu0  ;;  %v605_v22 = vadd.f32 %v2199_v7, %v604_v51 }
 0x102   : > { %v540_v47 = vadd.f32 %v1623_v45, %v2199_v7  ;;  %v534_v48 = vpop.f32.mrb[11].mxu0  ;;  %v668_v31 = vmax.f32 %v610_v28, 0.0 }
 0x103   : > { %v535_v50 = vadd.f32 %v2199_v7, %v534_v48  ;;  %1698 = vmatprep.mubr.f32.mxu1 %v651_v44  ;;  %v1647_v57 = vpop.f32.mrb[10].mxu1  ;;  %v667_v26 = vmax.f32 %v605_v22, 0.0 }
 0x104   : > { %1699 = vmatmul.mubr.f32.gmra.mrb[24].mxu1 %v652_v46  ;;  %v654_v54 = vmax.f32 %v540_v47, 0.0  ;;  %v614_v59 = vpop.f32.mrb[11].mxu1  ;;  %v620_v32 = vadd.f32 %v1647_v57, %v2199_v7 }
 0x105   : > { %v653_v52 = vmax.f32 %v535_v50, 0.0  ;;  %v1626_v53 = vpop.f32.mrb[12].mxu0  ;;  %v615_v25 = vadd.f32 %v2199_v7, %v614_v59 }
 0x106   : > { %v550_v55 = vadd.f32 %v1626_v53, %v2199_v7  ;;  %v544_v56 = vpop.f32.mrb[13].mxu0  ;;  %v670_v35 = vmax.f32 %v620_v32, 0.0 }
 0x107   : > { %v545_v58 = vadd.f32 %v2199_v7, %v544_v56  ;;  %1701 = vmatprep.mubr.f32.mxu1 %v653_v52  ;;  %v1650_v2 = vpop.f32.mrb[12].mxu1  ;;  %v669_v29 = vmax.f32 %v615_v25, 0.0 }
 0x108   : > { %1702 = vmatmul.mubr.f32.gmra.mrb[26].mxu1 %v654_v54  ;;  %v656_v63 = vmax.f32 %v550_v55, 0.0  ;;  %v624_v4 = vpop.f32.mrb[13].mxu1  ;;  %v630_v36 = vadd.f32 %v1650_v2, %v2199_v7 }
 0x109   : > { %v655_v60 = vmax.f32 %v545_v58, 0.0  ;;  %v1629_v61 = vpop.f32.mrb[14].mxu0  ;;  %v625_v30 = vadd.f32 %v2199_v7, %v624_v4 }
 0x10a   : > { %v560_v0 = vadd.f32 %v1629_v61, %v2199_v7  ;;  %v554_v1 = vpop.f32.mrb[15].mxu0  ;;  %v672_v38 = vmax.f32 %v630_v36, 0.0 }
 0x10b   : > { %v555_v3 = vadd.f32 %v2199_v7, %v554_v1  ;;  %1704 = vmatprep.mubr.f32.mxu1 %v655_v60  ;;  %v1653_v11 = vpop.f32.mrb[14].mxu1  ;;  %v671_v33 = vmax.f32 %v625_v30, 0.0 }
 0x10c   : > { %1705 = vmatmul.mubr.f32.gmra.mrb[28].mxu1 %v656_v63  ;;  %v658_v9 = vmax.f32 %v560_v0, 0.0  ;;  %v634_v12 = vpop.f32.mrb[15].mxu1  ;;  %v640_v39 = vadd.f32 %v1653_v11, %v2199_v7 }
 0x10d   : > { %v657_v5 = vmax.f32 %v555_v3, 0.0  ;;  %v635_v34 = vadd.f32 %v2199_v7, %v634_v12 }
 0x10e   : > { %v674_v40 = vmax.f32 %v640_v39, 0.0 }
 0x10f   : > { %1707 = vmatprep.mubr.f32.mxu1 %v657_v5  ;;  %v673_v37 = vmax.f32 %v635_v34, 0.0 }
 0x110   : > { %1708 = vmatmul.mubr.f32.gmra.mrb[30].mxu1 %v658_v9 }
 0x111   : > { %1710 = vmatprep.mubr.f32.mxu1 %v659_v6 }
 0x114   : > { %1711 = vmatmul.mubr.f32.gmra.mrb[32].mxu1 %v660_v15 }
 0x115   : > { %1713 = vmatprep.mubr.f32.mxu1 %v661_v13 }
 0x118   : > { %1714 = vmatmul.mubr.f32.gmra.mrb[34].mxu1 %v662_v20 }
 0x119   : > { %1716 = vmatprep.mubr.f32.mxu1 %v663_v18 }
 0x11c   : > { %1717 = vmatmul.mubr.f32.gmra.mrb[36].mxu1 %v664_v23 }
 0x11d   : > { %1719 = vmatprep.mubr.f32.mxu1 %v665_v21 }
 0x120   : > { %1720 = vmatmul.mubr.f32.gmra.mrb[38].mxu1 %v666_v27 }
 0x121   : > { %1722 = vmatprep.mubr.f32.mxu1 %v667_v26 }
 0x124   : > { %1723 = vmatmul.mubr.f32.gmra.mrb[40].mxu1 %v668_v31 }
 0x125   : > { %1725 = vmatprep.mubr.f32.mxu1 %v669_v29 }
 0x128   : > { %1726 = vmatmul.mubr.f32.gmra.mrb[42].mxu1 %v670_v35 }
 0x129   : > { %1728 = vmatprep.mubr.f32.mxu1 %v671_v33 }
 0x12c   : > { %1729 = vmatmul.mubr.f32.gmra.mrb[44].mxu1 %v672_v38 }
 0x12d   : > { %1731 = vmatprep.mubr.f32.mxu1 %v673_v37 }
 0x130   : > { %1732 = vmatmul.mubr.f32.gmra.mrb[46].mxu1 %v674_v40 }
 0x1c7   : > { %v1688_v42 = vpop.f32.mrb[16].mxu1 }
 0x1c8   : > { %v770_v43 = vadd.f32 %v1688_v42, %v2245_v41  ;;  %v764_v44 = vpop.f32.mrb[17].mxu1 }
 0x1c9   : > { %v765_v45 = vadd.f32 %v2245_v41, %v764_v44 }
 0x1ca   : > { %v924_v48 = vmax.f32 %v770_v43, 0.0 }
 0x1cb   : > { %v923_v46 = vmax.f32 %v765_v45, 0.0  ;;  %v1691_v47 = vpop.f32.mrb[18].mxu1 }
 0x1cc   : > { %v780_v7 = vadd.f32 %v1691_v47, %v2245_v41  ;;  %v774_v49 = vpop.f32.mrb[19].mxu1 }
 0x1cd   : > { %v775_v50 = vadd.f32 %v2245_v41, %v774_v49  ;;  %1750 = vmatprep.mubr.msk.f32.mxu0 %vm970_vm1, %v923_v46 }
 0x1ce   : > { %1751 = vmatmul.mubr.msk.f32.vlgmr.msra.gmra.mrb[16].mxu0 %vm970_vm1, %v924_v48  ;;  %v926_v53 = vmax.f32 %v780_v7, 0.0 }
 0x1cf   : > { %v925_v51 = vmax.f32 %v775_v50, 0.0  ;;  %v1694_v52 = vpop.f32.mrb[20].mxu1 }
 0x1d0   : > { %v790_v54 = vadd.f32 %v1694_v52, %v2245_v41  ;;  %v784_v55 = vpop.f32.mrb[21].mxu1 }
 0x1d1   : > { %v785_v56 = vadd.f32 %v2245_v41, %v784_v55  ;;  %1753 = vmatprep.mubr.msk.f32.mxu0 %vm970_vm1, %v925_v51 }
 0x1d2   : > { %1754 = vmatmul.mubr.msk.f32.gmra.mrb[18].mxu0 %vm970_vm1, %v926_v53  ;;  %v928_v59 = vmax.f32 %v790_v54, 0.0 }
 0x1d3   : > { %v927_v57 = vmax.f32 %v785_v56, 0.0  ;;  %v1697_v58 = vpop.f32.mrb[22].mxu1 }
 0x1d4   : > { %v800_v60 = vadd.f32 %v1697_v58, %v2245_v41  ;;  %v794_v61 = vpop.f32.mrb[23].mxu1 }
 0x1d5   : > { %v795_v62 = vadd.f32 %v2245_v41, %v794_v61  ;;  %1756 = vmatprep.mubr.msk.f32.mxu0 %vm970_vm1, %v927_v57 }
 0x1d6   : > { %1757 = vmatmul.mubr.msk.f32.gmra.mrb[20].mxu0 %vm970_vm1, %v928_v59  ;;  %v930_v1 = vmax.f32 %v800_v60, 0.0 }
 0x1d7   : > { %v929_v63 = vmax.f32 %v795_v62, 0.0  ;;  %v1700_v0 = vpop.f32.mrb[24].mxu1 }
 0x1d8   : > { %v810_v2 = vadd.f32 %v1700_v0, %v2245_v41  ;;  %v804_v3 = vpop.f32.mrb[25].mxu1 }
 0x1d9   : > { %v805_v4 = vadd.f32 %v2245_v41, %v804_v3  ;;  %1759 = vmatprep.mubr.msk.f32.mxu0 %vm970_vm1, %v929_v63 }
 0x1da   : > { %1760 = vmatmul.mubr.msk.f32.gmra.mrb[22].mxu0 %vm970_vm1, %v930_v1  ;;  %v932_v8 = vmax.f32 %v810_v2, 0.0 }
 0x1db   : > { %v931_v5 = vmax.f32 %v805_v4, 0.0  ;;  %v1703_v6 = vpop.f32.mrb[26].mxu1 }
 0x1dc   : > { %v820_v9 = vadd.f32 %v1703_v6, %v2245_v41  ;;  %v814_v10 = vpop.f32.mrb[27].mxu1 }
 0x1dd   : > { %v815_v11 = vadd.f32 %v2245_v41, %v814_v10  ;;  %1762 = vmatprep.mubr.msk.f32.mxu0 %vm970_vm1, %v931_v5 }
 0x1de   : > { %1763 = vmatmul.mubr.msk.f32.gmra.mrb[24].mxu0 %vm970_vm1, %v932_v8  ;;  %v934_v14 = vmax.f32 %v820_v9, 0.0 }
 0x1df   : > { %v933_v12 = vmax.f32 %v815_v11, 0.0  ;;  %v1706_v13 = vpop.f32.mrb[28].mxu1  ;;  %v2317_v11 = vld [vmem:[%s2443_s6] ss:$0 sm:$0xff] }
 0x1e0   : > { %v830_v15 = vadd.f32 %v1706_v13, %v2245_v41  ;;  %v824_v16 = vpop.f32.mrb[29].mxu1 }
 0x1e1   : > { %v825_v18 = vadd.f32 %v2245_v41, %v824_v16  ;;  %1765 = vmatprep.mubr.msk.f32.mxu0 %vm970_vm1, %v933_v12 }
 0x1e2   : > { %1766 = vmatmul.mubr.msk.f32.gmra.mrb[26].mxu0 %vm970_vm1, %v934_v14  ;;  %v936_v17 = vmax.f32 %v830_v15, 0.0 }
 0x1e3   : > { %v935_v19 = vmax.f32 %v825_v18, 0.0  ;;  %v1709_v20 = vpop.f32.mrb[30].mxu1 }
 0x1e4   : > { %v840_v21 = vadd.f32 %v1709_v20, %v2245_v41  ;;  %v834_v22 = vpop.f32.mrb[31].mxu1 }
 0x1e5   : > { %v835_v23 = vadd.f32 %v2245_v41, %v834_v22  ;;  %1768 = vmatprep.mubr.msk.f32.mxu0 %vm970_vm1, %v935_v19 }
 0x1e6   : > { %1769 = vmatmul.mubr.msk.f32.gmra.mrb[28].mxu0 %vm970_vm1, %v936_v17  ;;  %v938_v25 = vmax.f32 %v840_v21, 0.0 }
 0x1e7   : > { %v937_v24 = vmax.f32 %v835_v23, 0.0  ;;  %v1712_v26 = vpop.f32.mrb[32].mxu1 }
 0x1e8   : > { %v850_v27 = vadd.f32 %v1712_v26, %v2245_v41  ;;  %v844_v28 = vpop.f32.mrb[33].mxu1 }
 0x1e9   : > { %v845_v29 = vadd.f32 %v2245_v41, %v844_v28  ;;  %1771 = vmatprep.mubr.msk.f32.mxu0 %vm970_vm1, %v937_v24 }
 0x1ea   : > { %1772 = vmatmul.mubr.msk.f32.gmra.mrb[30].mxu0 %vm970_vm1, %v938_v25  ;;  %v940_v32 = vmax.f32 %v850_v27, 0.0 }
 0x1eb   : > { %v939_v30 = vmax.f32 %v845_v29, 0.0  ;;  %v1715_v31 = vpop.f32.mrb[34].mxu1 }
 0x1ec   : > { %v860_v33 = vadd.f32 %v1715_v31, %v2245_v41  ;;  %v854_v34 = vpop.f32.mrb[35].mxu1 }
 0x1ed   : > { %v855_v35 = vadd.f32 %v2245_v41, %v854_v34  ;;  %1774 = vmatprep.mubr.msk.f32.mxu0 %vm970_vm1, %v939_v30 }
 0x1ee   : > { %1775 = vmatmul.mubr.msk.f32.gmra.mrb[32].mxu0 %vm970_vm1, %v940_v32  ;;  %v942_v38 = vmax.f32 %v860_v33, 0.0 }
 0x1ef   : > { %v941_v36 = vmax.f32 %v855_v35, 0.0  ;;  %v1718_v37 = vpop.f32.mrb[36].mxu1 }
 0x1f0   : > { %v870_v39 = vadd.f32 %v1718_v37, %v2245_v41  ;;  %v864_v40 = vpop.f32.mrb[37].mxu1 }
 0x1f1   : > { %v865_v42 = vadd.f32 %v2245_v41, %v864_v40  ;;  %1777 = vmatprep.mubr.msk.f32.mxu0 %vm970_vm1, %v941_v36 }
 0x1f2   : > { %1778 = vmatmul.mubr.msk.f32.gmra.mrb[34].mxu0 %vm970_vm1, %v942_v38  ;;  %v944_v45 = vmax.f32 %v870_v39, 0.0 }
 0x1f3   : > { %v943_v43 = vmax.f32 %v865_v42, 0.0  ;;  %v1721_v44 = vpop.f32.mrb[38].mxu1 }
 0x1f4   : > { %v880_v46 = vadd.f32 %v1721_v44, %v2245_v41  ;;  %v874_v47 = vpop.f32.mrb[39].mxu1 }
 0x1f5   : > { %v875_v48 = vadd.f32 %v2245_v41, %v874_v47  ;;  %1780 = vmatprep.mubr.msk.f32.mxu0 %vm970_vm1, %v943_v43 }
 0x1f6   : > { %1781 = vmatmul.mubr.msk.f32.gmra.mrb[36].mxu0 %vm970_vm1, %v944_v45  ;;  %v946_v50 = vmax.f32 %v880_v46, 0.0 }
 0x1f7   : > { %v945_v7 = vmax.f32 %v875_v48, 0.0  ;;  %v1724_v49 = vpop.f32.mrb[40].mxu1 }
 0x1f8   : > { %v890_v51 = vadd.f32 %v1724_v49, %v2245_v41  ;;  %v884_v52 = vpop.f32.mrb[41].mxu1 }
 0x1f9   : > { %v885_v53 = vadd.f32 %v2245_v41, %v884_v52  ;;  %1783 = vmatprep.mubr.msk.f32.mxu0 %vm970_vm1, %v945_v7 }
 0x1fa   : > { %1784 = vmatmul.mubr.msk.f32.gmra.mrb[38].mxu0 %vm970_vm1, %v946_v50  ;;  %v948_v56 = vmax.f32 %v890_v51, 0.0 }
 0x1fb   : > { %v947_v54 = vmax.f32 %v885_v53, 0.0  ;;  %v1727_v55 = vpop.f32.mrb[42].mxu1 }
 0x1fc   : > { %v900_v57 = vadd.f32 %v1727_v55, %v2245_v41  ;;  %v894_v58 = vpop.f32.mrb[43].mxu1 }
 0x1fd   : > { %v895_v59 = vadd.f32 %v2245_v41, %v894_v58  ;;  %1786 = vmatprep.mubr.msk.f32.mxu0 %vm970_vm1, %v947_v54 }
 0x1fe   : > { %1787 = vmatmul.mubr.msk.f32.gmra.mrb[40].mxu0 %vm970_vm1, %v948_v56  ;;  %v950_v62 = vmax.f32 %v900_v57, 0.0 }
 0x1ff   : > { %v949_v60 = vmax.f32 %v895_v59, 0.0  ;;  %v1730_v61 = vpop.f32.mrb[44].mxu1 }
 0x200   : > { %v910_v63 = vadd.f32 %v1730_v61, %v2245_v41  ;;  %v904_v0 = vpop.f32.mrb[45].mxu1 }
 0x201   : > { %v905_v1 = vadd.f32 %v2245_v41, %v904_v0  ;;  %1789 = vmatprep.mubr.msk.f32.mxu0 %vm970_vm1, %v949_v60 }
 0x202   : > { %1790 = vmatmul.mubr.msk.f32.gmra.mrb[42].mxu0 %vm970_vm1, %v950_v62  ;;  %v952_v4 = vmax.f32 %v910_v63, 0.0 }
 0x203   : > { %v951_v2 = vmax.f32 %v905_v1, 0.0  ;;  %v1733_v3 = vpop.f32.mrb[46].mxu1 }
 0x204   : > { %v920_v5 = vadd.f32 %v1733_v3, %v2245_v41  ;;  %v914_v6 = vpop.f32.mrb[47].mxu1 }
 0x205   : > { %v915_v8 = vadd.f32 %v2245_v41, %v914_v6  ;;  %1792 = vmatprep.mubr.msk.f32.mxu0 %vm970_vm1, %v951_v2 }
 0x206   : > { %1793 = vmatmul.mubr.msk.f32.gmra.mrb[44].mxu0 %vm970_vm1, %v952_v4  ;;  %v954_v10 = vmax.f32 %v920_v5, 0.0 }
 0x207   : > { %v953_v9 = vmax.f32 %v915_v8, 0.0 }
 0x209   : > { %1795 = vmatprep.mubr.msk.f32.mxu0 %vm970_vm1, %v953_v9 }
 0x20a   : > { %1796 = vmatmul.mubr.msk.f32.gmra.mrb[46].mxu0 %vm970_vm1, %v954_v10 }
 0x2a1   : > { %v1752_v12 = vpop.f32.mrb[16].mxu0 }
 0x2a2   : > { %v1139_v41 = vadd.f32 %v1752_v12, %v2317_v11  ;;  %v1133_v13 = vpop.f32.mrb[17].mxu0 }
 0x2a3   : > { %v1134_v14 = vadd.f32 %v2317_v11, %v1133_v13 }
 0x2a4   : > { %1293 = vst [vmem:[%s2321_s23 + $0x8] sm:$0xff] %v1139_v41 }
 0x2a5   : > { %1292 = vst [vmem:[%s2321_s23] sm:$0xff] %v1134_v14  ;;  %v1755_v15 = vpop.f32.mrb[18].mxu0 }
 0x2a6   : > { %v1149_v16 = vadd.f32 %v1755_v15, %v2317_v11  ;;  %v1143_v18 = vpop.f32.mrb[19].mxu0 }
 0x2a7   : > { %v1144_v19 = vadd.f32 %v2317_v11, %v1143_v18 }
 0x2a8   : > { %1295 = vst [vmem:[%s2321_s23 + $0x18] sm:$0xff] %v1149_v16 }
 0x2a9   : > { %1294 = vst [vmem:[%s2321_s23 + $0x10] sm:$0xff] %v1144_v19  ;;  %v1758_v20 = vpop.f32.mrb[20].mxu0 }
 0x2aa   : > { %v1159_v17 = vadd.f32 %v1758_v20, %v2317_v11  ;;  %v1153_v21 = vpop.f32.mrb[21].mxu0 }
 0x2ab   : > { %v1154_v22 = vadd.f32 %v2317_v11, %v1153_v21 }
 0x2ac   : > { %1297 = vst [vmem:[%s2321_s23 + $0x28] sm:$0xff] %v1159_v17 }
 0x2ad   : > { %1296 = vst [vmem:[%s2321_s23 + $0x20] sm:$0xff] %v1154_v22  ;;  %v1761_v23 = vpop.f32.mrb[22].mxu0 }
 0x2ae   : > { %v1169_v24 = vadd.f32 %v1761_v23, %v2317_v11  ;;  %v1163_v26 = vpop.f32.mrb[23].mxu0 }
 0x2af   : > { %v1164_v25 = vadd.f32 %v2317_v11, %v1163_v26 }
 0x2b0   : > { %1299 = vst [vmem:[%s2321_s23 + $0x38] sm:$0xff] %v1169_v24 }
 0x2b1   : > { %1298 = vst [vmem:[%s2321_s23 + $0x30] sm:$0xff] %v1164_v25  ;;  %v1764_v27 = vpop.f32.mrb[24].mxu0 }
 0x2b2   : > { %v1179_v28 = vadd.f32 %v1764_v27, %v2317_v11  ;;  %v1173_v29 = vpop.f32.mrb[25].mxu0 }
 0x2b3   : > { %v1174_v30 = vadd.f32 %v2317_v11, %v1173_v29 }
 0x2b4   : > { %1301 = vst [vmem:[%s2321_s23 + $0x48] sm:$0xff] %v1179_v28 }
 0x2b5   : > { %1300 = vst [vmem:[%s2321_s23 + $0x40] sm:$0xff] %v1174_v30  ;;  %v1767_v31 = vpop.f32.mrb[26].mxu0 }
 0x2b6   : > { %v1189_v32 = vadd.f32 %v1767_v31, %v2317_v11  ;;  %v1183_v33 = vpop.f32.mrb[27].mxu0 }
 0x2b7   : > { %v1184_v34 = vadd.f32 %v2317_v11, %v1183_v33 }
 0x2b8   : > { %1303 = vst [vmem:[%s2321_s23 + $0x58] sm:$0xff] %v1189_v32 }
 0x2b9   : > { %1302 = vst [vmem:[%s2321_s23 + $0x50] sm:$0xff] %v1184_v34  ;;  %v1770_v35 = vpop.f32.mrb[28].mxu0 }
 0x2ba   : > { %v1199_v36 = vadd.f32 %v1770_v35, %v2317_v11  ;;  %v1193_v37 = vpop.f32.mrb[29].mxu0 }
 0x2bb   : > { %v1194_v38 = vadd.f32 %v2317_v11, %v1193_v37 }
 0x2bc   : > { %1305 = vst [vmem:[%s2321_s23 + $0x68] sm:$0xff] %v1199_v36 }
 0x2bd   : > { %1304 = vst [vmem:[%s2321_s23 + $0x60] sm:$0xff] %v1194_v38  ;;  %v1773_v39 = vpop.f32.mrb[30].mxu0 }
 0x2be   : > { %v1209_v40 = vadd.f32 %v1773_v39, %v2317_v11  ;;  %v1203_v42 = vpop.f32.mrb[31].mxu0 }
 0x2bf   : > { %v1204_v43 = vadd.f32 %v2317_v11, %v1203_v42 }
 0x2c0   : > { %1307 = vst [vmem:[%s2321_s23 + $0x78] sm:$0xff] %v1209_v40 }
 0x2c1   : > { %1306 = vst [vmem:[%s2321_s23 + $0x70] sm:$0xff] %v1204_v43  ;;  %v1776_v44 = vpop.f32.mrb[32].mxu0 }
 0x2c2   : > { %v1219_v45 = vadd.f32 %v1776_v44, %v2317_v11  ;;  %v1213_v46 = vpop.f32.mrb[33].mxu0 }
 0x2c3   : > { %v1214_v47 = vadd.f32 %v2317_v11, %v1213_v46 }
 0x2c4   : > { %1309 = vst [vmem:[%s2321_s23 + $0x88] sm:$0xff] %v1219_v45 }
 0x2c5   : > { %1308 = vst [vmem:[%s2321_s23 + $0x80] sm:$0xff] %v1214_v47  ;;  %v1779_v48 = vpop.f32.mrb[34].mxu0 }
 0x2c6   : > { %v1229_v7 = vadd.f32 %v1779_v48, %v2317_v11  ;;  %v1223_v49 = vpop.f32.mrb[35].mxu0 }
 0x2c7   : > { %v1224_v50 = vadd.f32 %v2317_v11, %v1223_v49 }
 0x2c8   : > { %1311 = vst [vmem:[%s2321_s23 + $0x98] sm:$0xff] %v1229_v7 }
 0x2c9   : > { %1310 = vst [vmem:[%s2321_s23 + $0x90] sm:$0xff] %v1224_v50  ;;  %v1782_v51 = vpop.f32.mrb[36].mxu0 }
 0x2ca   : > { %v1239_v52 = vadd.f32 %v1782_v51, %v2317_v11  ;;  %v1233_v53 = vpop.f32.mrb[37].mxu0 }
 0x2cb   : > { %v1234_v54 = vadd.f32 %v2317_v11, %v1233_v53 }
 0x2cc   : > { %1313 = vst [vmem:[%s2321_s23 + $0xa8] sm:$0xff] %v1239_v52 }
 0x2cd   : > { %1312 = vst [vmem:[%s2321_s23 + $0xa0] sm:$0xff] %v1234_v54  ;;  %v1785_v55 = vpop.f32.mrb[38].mxu0 }
 0x2ce   : > { %v1249_v56 = vadd.f32 %v1785_v55, %v2317_v11  ;;  %v1243_v57 = vpop.f32.mrb[39].mxu0 }
 0x2cf   : > { %v1244_v58 = vadd.f32 %v2317_v11, %v1243_v57 }
 0x2d0   : > { %1315 = vst [vmem:[%s2321_s23 + $0xb8] sm:$0xff] %v1249_v56 }
 0x2d1   : > { %1314 = vst [vmem:[%s2321_s23 + $0xb0] sm:$0xff] %v1244_v58  ;;  %v1788_v59 = vpop.f32.mrb[40].mxu0 }
 0x2d2   : > { %v1259_v60 = vadd.f32 %v1788_v59, %v2317_v11  ;;  %v1253_v61 = vpop.f32.mrb[41].mxu0 }
 0x2d3   : > { %v1254_v62 = vadd.f32 %v2317_v11, %v1253_v61 }
 0x2d4   : > { %1317 = vst [vmem:[%s2321_s23 + $0xc8] sm:$0xff] %v1259_v60 }
 0x2d5   : > { %1316 = vst [vmem:[%s2321_s23 + $0xc0] sm:$0xff] %v1254_v62  ;;  %v1791_v63 = vpop.f32.mrb[42].mxu0 }
 0x2d6   : > { %v1269_v0 = vadd.f32 %v1791_v63, %v2317_v11  ;;  %v1263_v1 = vpop.f32.mrb[43].mxu0 }
 0x2d7   : > { %v1264_v2 = vadd.f32 %v2317_v11, %v1263_v1 }
 0x2d8   : > { %1319 = vst [vmem:[%s2321_s23 + $0xd8] sm:$0xff] %v1269_v0 }
 0x2d9   : > { %1318 = vst [vmem:[%s2321_s23 + $0xd0] sm:$0xff] %v1264_v2  ;;  %v1794_v3 = vpop.f32.mrb[44].mxu0 }
 0x2da   : > { %v1279_v4 = vadd.f32 %v1794_v3, %v2317_v11  ;;  %v1273_v5 = vpop.f32.mrb[45].mxu0 }
 0x2db   : > { %v1274_v6 = vadd.f32 %v2317_v11, %v1273_v5 }
 0x2dc   : > { %1321 = vst [vmem:[%s2321_s23 + $0xe8] sm:$0xff] %v1279_v4 }
 0x2dd   : > { %1320 = vst [vmem:[%s2321_s23 + $0xe0] sm:$0xff] %v1274_v6  ;;  %v1797_v8 = vpop.f32.mrb[46].mxu0 }
 0x2de   : > { %v1289_v9 = vadd.f32 %v1797_v8, %v2317_v11  ;;  %v1283_v10 = vpop.f32.mrb[47].mxu0 }
 0x2df   : > { %v1284_v12 = vadd.f32 %v2317_v11, %v1283_v10 }
 0x2e0   : > { %1323 = vst [vmem:[%s2321_s23 + $0xf8] sm:$0xff] %v1289_v9 }
 0x2e1   : > { %1322 = vst [vmem:[%s2321_s23 + $0xf0] sm:$0xff] %v1284_v12 }
 0x2e2   : > { %1906 = shalt.err (!%p1903_p3)
}
 0x2e3   : > { %s1907_s19 = scalar_lea.hbm %s2387_s15, 4096  ;;  %s1911_s22 = scalar_lea.hbm %s2444_s7, 8192 }
 0x2e4   : > { %p1908_p4 = scmp.ne.s32.totalorder %s2387_s15, %s1907_s19  ;;  %p1912_p9 = scmp.lt.u32.totalorder %s2387_s15, %s2444_s7 }
 0x2e5   : > { %p1913_p10 = scmp.lt.u32.totalorder %s1911_s22, %s1907_s19  ;;  %p1915_p12 = scmp.lt.u32.totalorder %s1907_s19, %s2387_s15 }
 0x2e6   : > { %p1909_p7 = pnand %p1908_p4, %p2038_p5 }
 0x2e7   : > { %p1914_p11 = por %p1913_p10, %p1912_p9 }
 0x2e8   : > { %p1910_p8 = pneg %p1909_p7 }
 0x2e9   : > { %p1916_p13 = por %p1915_p12, %p1914_p11 }
 0x2eb   : > { %p1917_p0 = pnand %p1916_p13, %p1910_p8 }
 0x2ed   : > { %1920 = shalt.err (!%p1917_p0)
}
 0x2ee   : > { %s1958_s13 = smov 128   ;;  %s1959_s14 = smov 8  }
 0x2ef   : > { %1852 = dma.vmem_to_hbm [thread:$0]  (%p2038_p5), %s2389_s9, 4096, %s2387_s15, %s2396_s28, %s1958_s13, %s1958_s13, %s1959_s14  }
 0x2f0 PF: > { %p1858_p1 = scmp.ge.s32.totalorder %s1955_s27, 2  ;;  %s1353_s16 = sand.u32 1, %s1943_s24  }
 0x2f1   : > { %s1354_s8 = scalar_lea.sflag [#allocation3], %s1353_s16 }
 0x2f2   : > { %p1855_p2 = pnand %p1858_p1, %p2042_p6 }
 0x2f4   : > { %1938 = dma.done.wait (!%p1855_p2), %s1354_s8, 4096  }
 0x2f5   : > { %1940 = vsyncadd (!%p1855_p2), %s1354_s8, 4294963200  ;;  %p17_p3 = scmp.ge.s32.totalorder %s2025_s30, 4   ;;  %s2447_s24 = smov %s1947_s25 }
 0x2f6   : > { %s2448_s25 = smov %s1951_s26  ;;  %s2449_s26 = smov %s2036_s10 }
 0x2f7   : > { %s2450_s27 = smov %s2025_s30  ;;  %19 = sbr.rel (!%p17_p3) target bundleno = 3 (0x3), region = 83 }
 0x2fe   :  { %1359 = vsyncpa [#allocation3], 1 }
 0x2ff   :  { %1361 = vsyncpa [#allocation3 + $0x1], 1 }

</bundles_post_ra>
